<compile_context>
chip_gen: v6e
topology: v6e:2x2x1
jax: 0.10.0
libtpu: 0.0.40
codegen_flags: <defaults>
</compile_context>

<pallas_src>
import math

import jax
import jax.numpy as jnp
from jax.experimental import pallas as pl
from jax.experimental.pallas import tpu as pltpu


def _round_up(x, m):
    return (x + m - 1) // m * m


def _max_padding(params):
    return max(p for (_, _, p) in params["mean"] + params["logvar"])


# ----------------------------------------------------------------------------
# Fused kernel: mean conv stack + logvar conv stack + sample + entropy
# ----------------------------------------------------------------------------
def _make_fused_kernel(T, Tpad, dim_x, dim_z, mean_kp, logvar_kp):
    """mean_kp / logvar_kp: static per-layer (kernel_size, padding) config."""
    n_mean, n_logvar = len(mean_kp), len(logvar_kp)

    def kernel(*refs):
        # refs = [x, (w,b)*n_mean, (w,b)*n_logvar, noise,  samp, mean, ent,  xbuf]
        idx = 0
        x_ref = refs[idx]
        idx += 1
        mean_wb = [(refs[idx + 2 * i], refs[idx + 2 * i + 1]) for i in range(n_mean)]
        idx += 2 * n_mean
        logvar_wb = [(refs[idx + 2 * i], refs[idx + 2 * i + 1]) for i in range(n_logvar)]
        idx += 2 * n_logvar
        noise_ref = refs[idx]
        idx += 1
        samp_ref, mean_ref, ent_ref = refs[idx:idx + 3]
        idx += 3
        xbuf = refs[idx]

        # ---- zero-pad the input inside VMEM (channels x time, zero tail) ----
        xbuf[...] = jnp.zeros(xbuf.shape, jnp.float32)
        xbuf[0:dim_x, 0:T] = x_ref[...]
        x_pad = xbuf[...]                       # (cx_rows, Tpad)

        # valid time columns are [0, T); [T, Tpad) is the shared zero halo that
        # implements Conv1d zero padding for every layer.
        col = jax.lax.broadcasted_iota(jnp.int32, (dim_z, Tpad), 1)
        valid = col < T

        # Trace-time memo so identical im2col matrices (e.g. the first layer of the
        # mean and logvar branches, which both consume x_pad with the same K/pad)
        # are built exactly once.
        im2col_memo = {}

        def im2col(h, k_size, pad):
            key = (id(h), k_size, pad)
            if key not in im2col_memo:
                # k_size lane-rotations (XLU, zero-halo => exact padding, halo
                # columns masked after the matmul) stacked on the sublane axis.
                taps = [pltpu.roll(h, (pad - k) % Tpad, axis=1) for k in range(k_size)]
                im2col_memo[key] = jnp.concatenate(taps, axis=0).astype(jnp.bfloat16)
            return im2col_memo[key]             # (K*C, Tpad) bf16

        def conv_same(h, w_ref, b_ref, k_size, pad):
            # h: (C, Tpad) f32, valid data in [:, :T], zeros in [:, T:].
            cols = im2col(h, k_size, pad)
            out = jnp.dot(w_ref[...], cols,
                          preferred_element_type=jnp.float32)           # (dim_z, Tpad)
            out = out + b_ref[...]               # (dim_z, 1) bias, lane broadcast
            return jnp.where(valid, out, 0.0)    # re-establish the zero halo

        # logvar branch
        lsv = x_pad
        for (w_ref, b_ref), (k_size, pad) in zip(logvar_wb, logvar_kp):
            lsv = conv_same(lsv, w_ref, b_ref, k_size, pad)

        # mean branch
        h = x_pad
        for (w_ref, b_ref), (k_size, pad) in zip(mean_wb, mean_kp):
            h = conv_same(h, w_ref, b_ref, k_size, pad)
        mean = h

        mean_ref[...] = mean
        samp_ref[...] = mean + jnp.exp(lsv) * noise_ref[...]
        # entropy = sum(log_sqrt_var) / T  (halo columns of lsv are exactly zero)
        ent_ref[...] = (jnp.sum(lsv) / T).reshape(1, 1)

    return kernel


# ----------------------------------------------------------------------------
# Wrapper: weight prep (im2col layout, bf16) + single pallas_call
# ----------------------------------------------------------------------------
def stacked_convolutions_pallas(params, x, noise_lane):
    """Fused forward.  x: (T, dim_x) f32.  noise_lane: (dim_z, Tpad) f32 N(0,1) noise
    (time on the lane axis).  Returns (sample (T,dim_z), mean (T,dim_z), entropy)."""
    T, dim_x = x.shape
    dim_z = params["mean"][0][0].shape[0]
    p_max = _max_padding(params)
    Tpad = _round_up(T + p_max, 128)       # lane-dense working width, covers the halo
    cx_rows = _round_up(dim_x, 8)          # sublane-tile-aligned input channel rows
    assert noise_lane.shape == (dim_z, Tpad)

    def prep(w, b, cin_rows):
        # torch Conv1d weight (Cout, Cin, K) -> im2col weight (Cout, K*cin_rows), bf16
        cout, cin, k = w.shape
        wt = jnp.transpose(w, (0, 2, 1))                              # (Cout, K, Cin)
        wt = jnp.pad(wt, ((0, 0), (0, 0), (0, cin_rows - cin)))
        return (wt.reshape(cout, k * cin_rows).astype(jnp.bfloat16),
                b.reshape(cout, 1).astype(jnp.float32))

    def prep_branch(layers):
        args, kp, rows = [], [], cx_rows
        for (w, b, p) in layers:
            wf, bf = prep(w, b, rows)
            args += [wf, bf]
            kp.append((w.shape[2], p))
            rows = w.shape[0]              # next layer's input rows = this Cout
        return args, kp

    mean_args, mean_kp = prep_branch(params["mean"])
    logvar_args, logvar_kp = prep_branch(params["logvar"])

    kernel = _make_fused_kernel(T, Tpad, dim_x, dim_z, mean_kp, logvar_kp)
    n_in = 1 + len(mean_args) + len(logvar_args) + 1

    samp, mean, ent = pl.pallas_call(
        kernel,
        out_shape=(
            jax.ShapeDtypeStruct((dim_z, Tpad), jnp.float32),
            jax.ShapeDtypeStruct((dim_z, Tpad), jnp.float32),
            jax.ShapeDtypeStruct((1, 1), jnp.float32),
        ),
        in_specs=[pl.BlockSpec(memory_space=pltpu.MemorySpace.VMEM)] * n_in,
        out_specs=(
            pl.BlockSpec(memory_space=pltpu.MemorySpace.VMEM),
            pl.BlockSpec(memory_space=pltpu.MemorySpace.VMEM),
            pl.BlockSpec(memory_space=pltpu.MemorySpace.VMEM),
        ),
        scratch_shapes=[pltpu.VMEM((cx_rows, Tpad), jnp.float32)],
        compiler_params=pltpu.CompilerParams(vmem_limit_bytes=32 * 1024 * 1024),
    )(x.T, *mean_args, *logvar_args, noise_lane)

    return samp[:, :T].T, mean[:, :T].T, ent[0, 0]


def stacked_convolutions_forward(params, x, sample_rec, noise_key):
    """Mirrors StackedConvolutions.forward."""
    T = x.shape[0]
    dim_z = params["mean"][-1][0].shape[0]
    Tpad = _round_up(T + _max_padding(params), 128)
    # torch.randn(T, dim_z) equivalent, drawn directly in the kernel's (dim_z, Tpad) layout
    noise_lane = jax.random.normal(noise_key, (dim_z, Tpad), jnp.float32)
    sample, mean, entropy = stacked_convolutions_pallas(params, x, noise_lane)
    if sample_rec == 1:
        return sample, entropy
    # mirror torch: entropy placeholder has shape (1,) on this path
    return mean, jnp.zeros((1,), jnp.float32)


# ----------------------------------------------------------------------------
# Parameter construction (deterministic, PyTorch-default-style uniform init)
# ----------------------------------------------------------------------------
def init_conv_params(key, cout, cin, k):
    kw, kb = jax.random.split(key)
    bound = 1.0 / math.sqrt(cin * k)  # PyTorch Conv1d default bound
    w = jax.random.uniform(kw, (cout, cin, k), jnp.float32, -bound, bound)
    b = jax.random.uniform(kb, (cout,), jnp.float32, -bound, bound)
    return w, b


def build_stacked_convolutions_params(
    key, dim_x, dim_z,
    kernel_size=(11, 7, 5, 3), stride=(1,), padding=(5, 3, 2, 1),
    num_convs=(3, 1),
):
    kernel_size, stride, padding = list(kernel_size), list(stride), list(padding)
    assert len(kernel_size) == num_convs[0] + num_convs[1]
    if len(stride) == 1:
        stride = stride * len(kernel_size)
    if len(padding) == 1:
        padding = padding * len(kernel_size)
    assert all(s == 1 for s in stride)  # this kernel implements stride-1 "same" convs

    keys = jax.random.split(key, num_convs[0] + num_convs[1])
    mean_layers = []
    for i in range(num_convs[0]):
        cin = dim_x if i == 0 else dim_z
        w, b = init_conv_params(keys[i], dim_z, cin, kernel_size[i])
        mean_layers.append((w, b, padding[i]))
    logvar_layers = []
    for i in range(num_convs[1]):  # mirrors torch: reuses kernel_size[i]/padding[i]
        cin = dim_x if i == 0 else dim_z
        w, b = init_conv_params(keys[num_convs[0] + i], dim_z, cin, kernel_size[i])
        logvar_layers.append((w, b, padding[i]))
    return {"mean": mean_layers, "logvar": logvar_layers}


# ----------------------------------------------------------------------------
# Pure-JAX f32 reference (matches the PyTorch to_batch -> Conv1d stack path)
# ----------------------------------------------------------------------------
def _conv1d_same_ref(x_tc, w_ocik, b, pad):
    T, _ = x_tc.shape
    cout, _, k_size = w_ocik.shape
    xp = jnp.pad(x_tc, ((pad, pad), (0, 0)))
    out = jnp.zeros((T, cout), jnp.float32)
    for k in range(k_size):
        out = out + xp[k:k + T, :] @ w_ocik[:, :, k].T
    return out + b[None, :]


def _forward_ref(params, x, noise_tc):
    h = x
    for (w, b, p) in params["mean"]:
        h = _conv1d_same_ref(h, w, b, p)
    mean = h
    lsv = x
    for (w, b, p) in params["logvar"]:
        lsv = _conv1d_same_ref(lsv, w, b, p)
    sample = mean + jnp.exp(lsv) * noise_tc
    entropy = jnp.sum(lsv) / lsv.shape[0]
    return sample, mean, entropy


if __name__ == "__main__":
    dim_x, dim_z, T = 4, 8, 16

    root = jax.random.PRNGKey(0)
    k_params, k_x, k_noise = jax.random.split(root, 3)

    params = build_stacked_convolutions_params(k_params, dim_x, dim_z)
    x = jax.random.normal(k_x, (T, dim_x), jnp.float32)   # module input: (T, dim_x)

    Tpad = _round_up(T + _max_padding(params), 128)
    noise_lane = jax.random.normal(k_noise, (dim_z, Tpad), jnp.float32)

    sample, mean, entropy = stacked_convolutions_pallas(params, x, noise_lane)
    jax.block_until_ready((sample, mean, entropy))

    # f32 reference; tolerances cover the kernel's bf16 MXU inputs
    sample_r, mean_r, entropy_r = _forward_ref(params, x, noise_lane[:, :T].T)
    assert sample.shape == (T, dim_z) and mean.shape == (T, dim_z) and entropy.shape == ()
    assert bool(jnp.allclose(mean, mean_r, rtol=1e-1, atol=1e-1))
    assert bool(jnp.allclose(sample, sample_r, rtol=1e-1, atol=2.5e-1))
    assert bool(jnp.allclose(entropy, entropy_r, rtol=1e-1, atol=5e-2))
    assert bool(jnp.all(jnp.isfinite(sample))) and bool(jnp.isfinite(entropy))

    # module-level API (sample_rec == 1 path)
    sample2, entropy2 = stacked_convolutions_forward(params, x, 1, k_noise)
    jax.block_until_ready((sample2, entropy2))
    assert sample2.shape == (T, dim_z) and entropy2.shape == ()

    print("KERNEL_OK")
</pallas_src>

<mosaic_0001>
module attributes {stable_mosaic.version = 11 : i64} {
  func.func @kernel(%arg0: memref<4x16xf32, #tpu.memory_space<vmem>>, %arg1: memref<8x88xbf16, #tpu.memory_space<vmem>>, %arg2: memref<8x1xf32, #tpu.memory_space<vmem>>, %arg3: memref<8x56xbf16, #tpu.memory_space<vmem>>, %arg4: memref<8x1xf32, #tpu.memory_space<vmem>>, %arg5: memref<8x40xbf16, #tpu.memory_space<vmem>>, %arg6: memref<8x1xf32, #tpu.memory_space<vmem>>, %arg7: memref<8x88xbf16, #tpu.memory_space<vmem>>, %arg8: memref<8x1xf32, #tpu.memory_space<vmem>>, %arg9: memref<8x128xf32, #tpu.memory_space<vmem>>, %arg10: memref<8x128xf32, #tpu.memory_space<vmem>>, %arg11: memref<8x128xf32, #tpu.memory_space<vmem>>, %arg12: memref<1x1xf32, #tpu.memory_space<vmem>>, %arg13: memref<8x128xf32, #tpu.memory_space<vmem>>) attributes {dimension_semantics = [], scalar_prefetch = 0 : i64, scratch_operands = 1 : i64, tpu.core_type = #tpu.core_type<tc>} {
    %cst = arith.constant 0.000000e+00 : f32
    %0 = vector.broadcast %cst : f32 to vector<8x128xf32>
    %c0 = arith.constant 0 : index
    %c0_0 = arith.constant 0 : index
    %1 = vector.load %arg13[%c0, %c0_0] : memref<8x128xf32, #tpu.memory_space<vmem>>, vector<8x128xf32>
    tpu.vector_store %arg13[%c0, %c0_0], %0 {strides = array<i32>} : memref<8x128xf32, #tpu.memory_space<vmem>>, vector<8x128xf32>,
    %c0_1 = arith.constant 0 : index
    %c0_2 = arith.constant 0 : index
    %2 = vector.load %arg0[%c0_1, %c0_2] : memref<4x16xf32, #tpu.memory_space<vmem>>, vector<4x16xf32>
    %c0_3 = arith.constant 0 : index
    %c0_4 = arith.constant 0 : index
    %3 = vector.load %arg13[%c0_3, %c0_4] : memref<8x128xf32, #tpu.memory_space<vmem>>, vector<4x16xf32>
    tpu.vector_store %arg13[%c0_3, %c0_4], %2 {strides = array<i32>} : memref<8x128xf32, #tpu.memory_space<vmem>>, vector<4x16xf32>,
    %c0_5 = arith.constant 0 : index
    %c0_6 = arith.constant 0 : index
    %4 = vector.load %arg13[%c0_5, %c0_6] : memref<8x128xf32, #tpu.memory_space<vmem>>, vector<8x128xf32>
    %5 = tpu.iota {dimensions = array<i32: 1>} : vector<8x128xi32>
    %c16_i32 = arith.constant 16 : i32
    %6 = vector.broadcast %c16_i32 : i32 to vector<8x128xi32>
    %7 = arith.cmpi slt, %5, %6 : vector<8x128xi32>
    %c5_i32 = arith.constant 5 : i32
    %8 = tpu.dynamic_rotate %4 by %c5_i32 dim 1 : vector<8x128xf32>, i32 -> vector<8x128xf32>
    %c4_i32 = arith.constant 4 : i32
    %9 = tpu.dynamic_rotate %4 by %c4_i32 dim 1 : vector<8x128xf32>, i32 -> vector<8x128xf32>
    %c3_i32 = arith.constant 3 : i32
    %10 = tpu.dynamic_rotate %4 by %c3_i32 dim 1 : vector<8x128xf32>, i32 -> vector<8x128xf32>
    %c2_i32 = arith.constant 2 : i32
    %11 = tpu.dynamic_rotate %4 by %c2_i32 dim 1 : vector<8x128xf32>, i32 -> vector<8x128xf32>
    %c1_i32 = arith.constant 1 : i32
    %12 = tpu.dynamic_rotate %4 by %c1_i32 dim 1 : vector<8x128xf32>, i32 -> vector<8x128xf32>
    %c0_i32 = arith.constant 0 : i32
    %13 = tpu.dynamic_rotate %4 by %c0_i32 dim 1 : vector<8x128xf32>, i32 -> vector<8x128xf32>
    %c127_i32 = arith.constant 127 : i32
    %14 = tpu.dynamic_rotate %4 by %c127_i32 dim 1 : vector<8x128xf32>, i32 -> vector<8x128xf32>
    %c126_i32 = arith.constant 126 : i32
    %15 = tpu.dynamic_rotate %4 by %c126_i32 dim 1 : vector<8x128xf32>, i32 -> vector<8x128xf32>
    %c125_i32 = arith.constant 125 : i32
    %16 = tpu.dynamic_rotate %4 by %c125_i32 dim 1 : vector<8x128xf32>, i32 -> vector<8x128xf32>
    %c124_i32 = arith.constant 124 : i32
    %17 = tpu.dynamic_rotate %4 by %c124_i32 dim 1 : vector<8x128xf32>, i32 -> vector<8x128xf32>
    %c123_i32 = arith.constant 123 : i32
    %18 = tpu.dynamic_rotate %4 by %c123_i32 dim 1 : vector<8x128xf32>, i32 -> vector<8x128xf32>
    %19 = tpu.concatenate %8, %9, %10, %11, %12, %13, %14, %15, %16, %17, %18 in 0 : vector<8x128xf32>, vector<8x128xf32>, vector<8x128xf32>, vector<8x128xf32>, vector<8x128xf32>, vector<8x128xf32>, vector<8x128xf32>, vector<8x128xf32>, vector<8x128xf32>, vector<8x128xf32>, vector<8x128xf32> -> vector<88x128xf32>
    %20 = arith.truncf %19 : vector<88x128xf32> to vector<88x128xbf16>
    %c0_7 = arith.constant 0 : index
    %c0_8 = arith.constant 0 : index
    %21 = vector.load %arg7[%c0_7, %c0_8] : memref<8x88xbf16, #tpu.memory_space<vmem>>, vector<8x88xbf16>
    %cst_9 = arith.constant dense<0.000000e+00> : vector<8x128xf32>
    %22 = tpu.matmul %21, %20, %cst_9 {dimension_numbers = #tpu.dot_dimension_numbers<[1], [0], [0], [1], [0, 0, 1, 1], [], []>} : vector<8x88xbf16>, vector<88x128xbf16>, vector<8x128xf32> -> vector<8x128xf32>
    %c0_10 = arith.constant 0 : index
    %c0_11 = arith.constant 0 : index
    %23 = vector.load %arg8[%c0_10, %c0_11] : memref<8x1xf32, #tpu.memory_space<vmem>>, vector<8x1xf32>
    %24 = vector.broadcast %23 : vector<8x1xf32> to vector<8x128xf32>
    %25 = arith.addf %22, %24 : vector<8x128xf32>
    %cst_12 = arith.constant 0.000000e+00 : f32
    %26 = vector.broadcast %cst_12 : f32 to vector<8x128xf32>
    %27 = arith.select %7, %25, %26 : vector<8x128xi1>, vector<8x128xf32>
    %c0_13 = arith.constant 0 : index
    %c0_14 = arith.constant 0 : index
    %28 = vector.load %arg1[%c0_13, %c0_14] : memref<8x88xbf16, #tpu.memory_space<vmem>>, vector<8x88xbf16>
    %cst_15 = arith.constant dense<0.000000e+00> : vector<8x128xf32>
    %29 = tpu.matmul %28, %20, %cst_15 {dimension_numbers = #tpu.dot_dimension_numbers<[1], [0], [0], [1], [0, 0, 1, 1], [], []>} : vector<8x88xbf16>, vector<88x128xbf16>, vector<8x128xf32> -> vector<8x128xf32>
    %c0_16 = arith.constant 0 : index
    %c0_17 = arith.constant 0 : index
    %30 = vector.load %arg2[%c0_16, %c0_17] : memref<8x1xf32, #tpu.memory_space<vmem>>, vector<8x1xf32>
    %31 = vector.broadcast %30 : vector<8x1xf32> to vector<8x128xf32>
    %32 = arith.addf %29, %31 : vector<8x128xf32>
    %cst_18 = arith.constant 0.000000e+00 : f32
    %33 = vector.broadcast %cst_18 : f32 to vector<8x128xf32>
    %34 = arith.select %7, %32, %33 : vector<8x128xi1>, vector<8x128xf32>
    %c3_i32_19 = arith.constant 3 : i32
    %35 = tpu.dynamic_rotate %34 by %c3_i32_19 dim 1 : vector<8x128xf32>, i32 -> vector<8x128xf32>
    %c2_i32_20 = arith.constant 2 : i32
    %36 = tpu.dynamic_rotate %34 by %c2_i32_20 dim 1 : vector<8x128xf32>, i32 -> vector<8x128xf32>
    %c1_i32_21 = arith.constant 1 : i32
    %37 = tpu.dynamic_rotate %34 by %c1_i32_21 dim 1 : vector<8x128xf32>, i32 -> vector<8x128xf32>
    %c0_i32_22 = arith.constant 0 : i32
    %38 = tpu.dynamic_rotate %34 by %c0_i32_22 dim 1 : vector<8x128xf32>, i32 -> vector<8x128xf32>
    %c127_i32_23 = arith.constant 127 : i32
    %39 = tpu.dynamic_rotate %34 by %c127_i32_23 dim 1 : vector<8x128xf32>, i32 -> vector<8x128xf32>
    %c126_i32_24 = arith.constant 126 : i32
    %40 = tpu.dynamic_rotate %34 by %c126_i32_24 dim 1 : vector<8x128xf32>, i32 -> vector<8x128xf32>
    %c125_i32_25 = arith.constant 125 : i32
    %41 = tpu.dynamic_rotate %34 by %c125_i32_25 dim 1 : vector<8x128xf32>, i32 -> vector<8x128xf32>
    %42 = tpu.concatenate %35, %36, %37, %38, %39, %40, %41 in 0 : vector<8x128xf32>, vector<8x128xf32>, vector<8x128xf32>, vector<8x128xf32>, vector<8x128xf32>, vector<8x128xf32>, vector<8x128xf32> -> vector<56x128xf32>
    %43 = arith.truncf %42 : vector<56x128xf32> to vector<56x128xbf16>
    %c0_26 = arith.constant 0 : index
    %c0_27 = arith.constant 0 : index
    %44 = vector.load %arg3[%c0_26, %c0_27] : memref<8x56xbf16, #tpu.memory_space<vmem>>, vector<8x56xbf16>
    %cst_28 = arith.constant dense<0.000000e+00> : vector<8x128xf32>
    %45 = tpu.matmul %44, %43, %cst_28 {dimension_numbers = #tpu.dot_dimension_numbers<[1], [0], [0], [1], [0, 0, 1, 1], [], []>} : vector<8x56xbf16>, vector<56x128xbf16>, vector<8x128xf32> -> vector<8x128xf32>
    %c0_29 = arith.constant 0 : index
    %c0_30 = arith.constant 0 : index
    %46 = vector.load %arg4[%c0_29, %c0_30] : memref<8x1xf32, #tpu.memory_space<vmem>>, vector<8x1xf32>
    %47 = vector.broadcast %46 : vector<8x1xf32> to vector<8x128xf32>
    %48 = arith.addf %45, %47 : vector<8x128xf32>
    %cst_31 = arith.constant 0.000000e+00 : f32
    %49 = vector.broadcast %cst_31 : f32 to vector<8x128xf32>
    %50 = arith.select %7, %48, %49 : vector<8x128xi1>, vector<8x128xf32>
    %c2_i32_32 = arith.constant 2 : i32
    %51 = tpu.dynamic_rotate %50 by %c2_i32_32 dim 1 : vector<8x128xf32>, i32 -> vector<8x128xf32>
    %c1_i32_33 = arith.constant 1 : i32
    %52 = tpu.dynamic_rotate %50 by %c1_i32_33 dim 1 : vector<8x128xf32>, i32 -> vector<8x128xf32>
    %c0_i32_34 = arith.constant 0 : i32
    %53 = tpu.dynamic_rotate %50 by %c0_i32_34 dim 1 : vector<8x128xf32>, i32 -> vector<8x128xf32>
    %c127_i32_35 = arith.constant 127 : i32
    %54 = tpu.dynamic_rotate %50 by %c127_i32_35 dim 1 : vector<8x128xf32>, i32 -> vector<8x128xf32>
    %c126_i32_36 = arith.constant 126 : i32
    %55 = tpu.dynamic_rotate %50 by %c126_i32_36 dim 1 : vector<8x128xf32>, i32 -> vector<8x128xf32>
    %56 = tpu.concatenate %51, %52, %53, %54, %55 in 0 : vector<8x128xf32>, vector<8x128xf32>, vector<8x128xf32>, vector<8x128xf32>, vector<8x128xf32> -> vector<40x128xf32>
    %57 = arith.truncf %56 : vector<40x128xf32> to vector<40x128xbf16>
    %c0_37 = arith.constant 0 : index
    %c0_38 = arith.constant 0 : index
    %58 = vector.load %arg5[%c0_37, %c0_38] : memref<8x40xbf16, #tpu.memory_space<vmem>>, vector<8x40xbf16>
    %cst_39 = arith.constant dense<0.000000e+00> : vector<8x128xf32>
    %59 = tpu.matmul %58, %57, %cst_39 {dimension_numbers = #tpu.dot_dimension_numbers<[1], [0], [0], [1], [0, 0, 1, 1], [], []>} : vector<8x40xbf16>, vector<40x128xbf16>, vector<8x128xf32> -> vector<8x128xf32>
    %c0_40 = arith.constant 0 : index
    %c0_41 = arith.constant 0 : index
    %60 = vector.load %arg6[%c0_40, %c0_41] : memref<8x1xf32, #tpu.memory_space<vmem>>, vector<8x1xf32>
    %61 = vector.broadcast %60 : vector<8x1xf32> to vector<8x128xf32>
    %62 = arith.addf %59, %61 : vector<8x128xf32>
    %cst_42 = arith.constant 0.000000e+00 : f32
    %63 = vector.broadcast %cst_42 : f32 to vector<8x128xf32>
    %64 = arith.select %7, %62, %63 : vector<8x128xi1>, vector<8x128xf32>
    %c0_43 = arith.constant 0 : index
    %c0_44 = arith.constant 0 : index
    %65 = vector.load %arg11[%c0_43, %c0_44] : memref<8x128xf32, #tpu.memory_space<vmem>>, vector<8x128xf32>
    tpu.vector_store %arg11[%c0_43, %c0_44], %64 {strides = array<i32>} : memref<8x128xf32, #tpu.memory_space<vmem>>, vector<8x128xf32>,
    %66 = math.exp %27 : vector<8x128xf32>
    %c0_45 = arith.constant 0 : index
    %c0_46 = arith.constant 0 : index
    %67 = vector.load %arg9[%c0_45, %c0_46] : memref<8x128xf32, #tpu.memory_space<vmem>>, vector<8x128xf32>
    %68 = arith.mulf %66, %67 : vector<8x128xf32>
    %69 = arith.addf %64, %68 : vector<8x128xf32>
    %c0_47 = arith.constant 0 : index
    %c0_48 = arith.constant 0 : index
    %70 = vector.load %arg10[%c0_47, %c0_48] : memref<8x128xf32, #tpu.memory_space<vmem>>, vector<8x128xf32>
    tpu.vector_store %arg10[%c0_47, %c0_48], %69 {strides = array<i32>} : memref<8x128xf32, #tpu.memory_space<vmem>>, vector<8x128xf32>,
    %71 = vector.shape_cast %27 : vector<8x128xf32> to vector<1x8x128xf32>
    %cst_49 = arith.constant dense<0.000000e+00> : vector<1xf32>
    %72 = vector.multi_reduction <add>, %71, %cst_49 [1, 2] : vector<1x8x128xf32> to vector<1xf32>
    %73 = vector.shape_cast %72 : vector<1xf32> to vector<1x1x1xf32>
    %74 = vector.extract %73[0, 0, 0] : f32 from vector<1x1x1xf32>
    %cst_50 = arith.constant 1.600000e+01 : f32
    %75 = arith.divf %74, %cst_50 : f32
    %76 = vector.broadcast %75 : f32 to vector<1x1xf32>
    %c0_51 = arith.constant 0 : index
    %c0_52 = arith.constant 0 : index
    %77 = vector.load %arg12[%c0_51, %c0_52] : memref<1x1xf32, #tpu.memory_space<vmem>>, vector<1x1xf32>
    tpu.vector_store %arg12[%c0_51, %c0_52], %76 {strides = array<i32>} : memref<1x1xf32, #tpu.memory_space<vmem>>, vector<1x1xf32>,
    return
  }
}

</mosaic_0001>

<bundles_post_ra>
// kernel: tpu_custom_call.1
= control target key start
LH: loop header
LB: loop body
LE: loop exit
PB: predicated region body
PF: predicated region fallthrough
CT: control target
= control target key end

     0   :  { %18 = vsyncpa [#allocation4], 0  ;;  %vm43_vm0 = vcmask 125952   ;;  %v556_v1 = vmov 0.0   ;;  %s741_s0 = inlined_call_operand.vmem [shape: f32[4,16], index: 0, kind: input, shape index: {}]   ;;  %s742_s1 = inlined_call_operand.vmem [shape: bf16[8,88], index: 1, kind: input, shape index: {}]   ;;  %s743_s2 = inlined_call_operand.vmem [shape: f32[8,1], index: 2, kind: input, shape index: {}]   ;;  %s744_s3 = inlined_call_operand.vmem [shape: bf16[8,56], index: 3, kind: input, shape index: {}]   ;;  %s745_s4 = inlined_call_operand.vmem [shape: f32[8,1], index: 4, kind: input, shape index: {}]   ;;  %s746_s5 = inlined_call_operand.vmem [shape: bf16[8,40], index: 5, kind: input, shape index: {}]   ;;  %s747_s6 = inlined_call_operand.vmem [shape: f32[8,1], index: 6, kind: input, shape index: {}]   ;;  %s748_s7 = inlined_call_operand.vmem [shape: bf16[8,88], index: 7, kind: input, shape index: {}]   ;;  %s749_s8 = inlined_call_operand.vmem [shape: f32[8,1], index: 8, kind: input, shape index: {}]   ;;  %s750_s9 = inlined_call_operand.vmem [shape: f32[8,128], index: 9, kind: input, shape index: {}]   ;;  %s751_s10 = inlined_call_operand.hbm [shape: f32[8,128], index: 10, kind: output, shape index: {0}]   ;;  %s752_s11 = inlined_call_operand.hbm [shape: f32[8,128], index: 11, kind: output, shape index: {1}]   ;;  %s753_s12 = inlined_call_operand.hbm [shape: f32[1,1], index: 12, kind: output, shape index: {2}]  }
   0x1   :  { %v42_v0 = vld [vmem:[%s741_s0] sm:$0xf]  ;;  %41 = vst [vmem:[#allocation2] sm:$0xff] %v556_v1  ;;  %415 = vmatprep.subr.bf16.mxu0 %v556_v1  ;;  %431 = vmatprep.subr.bf16.mxu1 %v556_v1 }
   0x2   :  { %19 = vsyncpa [#allocation6], 0  ;;  %44 = vst.msk [vmem:[#allocation2] sm:$0xf] %vm43_vm0, %v42_v0  ;;  %s557_s23 = smov 123   ;;  %s558_s24 = smov 124   ;;  %v46_v24 = vlaneseq }
   0x3   :  { %s559_s25 = smov 125   ;;  %s560_s26 = smov 127   ;;  %vm563_vm1 = vmmov 0   ;;  %v566_v3 = vmov 0   ;;  %v132_v4 = vld [vmem:[%s743_s2] sm:$0xff]  ;;  %vm86_vm2 = vcmask 1043456  }
   0x4   :  { %s561_s0 = smov 126   ;;  %s562_s27 = smov 1   ;;  %443 = vmatprep.mubr.msk.bf16.mxu1 %vm563_vm1, %v556_v1  ;;  %427 = vmatprep.mubr.msk.bf16.mxu0 %vm563_vm1, %v556_v1  ;;  %vm82_vm3 = vcmask 719872   ;;  %v131_v22 = vld [vmem:[%s742_s1] sm:$0xf]  ;;  %v680_v25 = vand.u32 127, %v46_v24 }
   0x5   :  { %s564_s28 = smov 2   ;;  %s565_s29 = smov 3   ;;  %488 = vset.pattern.permute.xlu0 %v566_v3  ;;  %489 = vset.pattern.permute.xlu1 %v566_v3  ;;  %v75_v23 = vld [vmem:[%s748_s7] sm:$0xf]  ;;  %vm569_vm5 = vmmov 1   ;;  %vm205_vm7 = vcmask 457728  }
   0x6   :  { %s567_s30 = smov 4   ;;  %s568_s13 = smov 5   ;;  %vm48_vm4 = vcmp.lt.s32.totalorder %v680_v25, 16  ;;  %v199_v33 = vld [vmem:[%s745_s4] sm:$0xff]  ;;  %vm271_vm9 = vcmask 326656  }
   0x7   :  { %vm384_vm6 = vmpackc.low %vm48_vm4, %vm569_vm5  ;;  %v198_v49 = vld [vmem:[%s744_s3] sm:$0xf] }
   0x8   :  { %v76_v57 = vld [vmem:[%s749_s8] sm:$0xff]  ;;  %vm388_vm8 = vmpackc.low %vm569_vm5, %vm48_vm4 }
   0x9   :  { %v45_v2 = vld [vmem:[#allocation2] sm:$0xff] }
   0xa   :  { %67 = vrot.lane.b32.xlu0 %v45_v2, %s557_s23  ;;  %65 = vrot.lane.b32.xlu1 %v45_v2, %s558_s24  ;;  %v265_v58 = vld [vmem:[%s747_s6] sm:$0xff] }
   0xe   :  { %63 = vrot.lane.b32.xlu0 %v45_v2, %s559_s25  ;;  %59 = vrot.lane.b32.xlu1 %v45_v2, %s560_s26 }
  0x12   :  { %61 = vrot.lane.b32.xlu0 %v45_v2, %s561_s0  ;;  %57 = vrot.lane.b32.xlu1 %v45_v2, %s562_s27 }
  0x16   :  { %55 = vrot.lane.b32.xlu1 %v45_v2, %s564_s28  ;;  %53 = vrot.lane.b32.xlu0 %v45_v2, %s565_s29 }
  0x1a   :  { %51 = vrot.lane.b32.xlu1 %v45_v2, %s567_s30  ;;  %49 = vrot.lane.b32.xlu0 %v45_v2, %s568_s13 }
  0x1e   :  { %135 = vperm.xlu0 %488, %v132_v4   ;;  %v264_v4 = vld [vmem:[%s746_s5] sm:$0xf]  ;;  %s570_s5 = smov [#allocation5]  }
  0x1f   :  { %s357_s23 = sshll.u32 %s570_s5, 4  ;;  %s358_s23 = int_to_ptr.vmem [resolvable:$true] %s357_s23 }
  0x20   :  { %p497_p1 = scmp.lt.s32.totalorder %s358_s23, %s358_s23 }
  0x7c   :  { %v68_v5 = vpop.permute.xlu0 %67  ;;  %v66_v6 = vpop.permute.xlu1 %65 }
  0x7d   :  { %v74_v7 = vpack.c.bf16 %v68_v5, %v68_v5 }
  0x7f   :  { %v88_v8 = vsel %vm86_vm2, %v74_v7, 0 }
  0x80   :  { %416 = vmatpush3.bf16.msra.mxu0 %v88_v8  ;;  %432 = vmatpush3.bf16.msra.mxu1 %v88_v8  ;;  %v64_v9 = vpop.permute.xlu0 %63  ;;  %v60_v10 = vpop.permute.xlu1 %59 }
  0x81   :  { %v73_v11 = vpack.c.bf16 %v66_v6, %v64_v9  ;;  %417 = vmatprep.subr.bf16.mxu0 %v556_v1  ;;  %433 = vmatprep.subr.bf16.mxu1 %v556_v1 }
  0x84   :  { %418 = vmatpush3.bf16.msra.mxu0 %v73_v11  ;;  %434 = vmatpush3.bf16.msra.mxu1 %v73_v11  ;;  %v62_v12 = vpop.permute.xlu0 %61  ;;  %v58_v13 = vpop.permute.xlu1 %57 }
  0x85   :  { %v72_v14 = vpack.c.bf16 %v62_v12, %v60_v10  ;;  %419 = vmatprep.subr.bf16.mxu0 %v556_v1  ;;  %435 = vmatprep.subr.bf16.mxu1 %v556_v1  ;;  %v71_v15 = vpack.c.bf16 %v45_v2, %v58_v13 }
  0x88   :  { %420 = vmatpush3.bf16.msra.mxu0 %v72_v14  ;;  %436 = vmatpush3.bf16.msra.mxu1 %v72_v14  ;;  %v56_v16 = vpop.permute.xlu1 %55  ;;  %v54_v17 = vpop.permute.xlu0 %53 }
  0x89   :  { %421 = vmatprep.subr.bf16.mxu0 %v556_v1  ;;  %437 = vmatprep.subr.bf16.mxu1 %v556_v1  ;;  %v70_v18 = vpack.c.bf16 %v56_v16, %v54_v17  ;;  %v322_v16 = vld [vmem:[%s750_s9] sm:$0xff] }
  0x8c   :  { %422 = vmatpush3.bf16.msra.mxu0 %v71_v15  ;;  %438 = vmatpush3.bf16.msra.mxu1 %v71_v15  ;;  %v52_v19 = vpop.permute.xlu1 %51  ;;  %v50_v20 = vpop.permute.xlu0 %49 }
  0x8d   :  { %423 = vmatprep.subr.bf16.mxu0 %v556_v1  ;;  %439 = vmatprep.subr.bf16.mxu1 %v556_v1  ;;  %v69_v21 = vpack.c.bf16 %v52_v19, %v50_v20 }
  0x90   :  { %424 = vmatpush3.bf16.msra.mxu0 %v70_v18  ;;  %440 = vmatpush3.bf16.msra.mxu1 %v70_v18 }
  0x91   :  { %425 = vmatprep.subr.bf16.mxu0 %v556_v1  ;;  %441 = vmatprep.subr.bf16.mxu1 %v556_v1 }
  0x94   :  { %426 = vmatpush3.bf16.msra.mxu0 %v69_v21  ;;  %442 = vmatpush3.bf16.msra.mxu1 %v69_v21 }
  0x95   :  { %447 = vmatprep.subr.bf16.mxu0 %v556_v1  ;;  %459 = vmatprep.subr.bf16.mxu1 %v556_v1 }
  0x97   :  { %444 = vmatmul.mubr.msk.bf16.vlgmr.msra.gmra.mxu1 %vm82_vm3, %v131_v22  ;;  %428 = vmatmul.mubr.msk.bf16.vlgmr.msra.gmra.mxu0 %vm82_vm3, %v75_v23 }
  0x98   :  { %465 = vmatprep.mubr.msk.bf16.mxu1 %vm563_vm1, %v556_v1  ;;  %455 = vmatprep.mubr.msk.bf16.mxu0 %vm563_vm1, %v556_v1 }
  0x99   :  { %v136_v26 = vpop.permute.xlu0 %135 }
 0x157   :  { %v175_v27 = vpop.f32.mrf.mxu1  ;;  %v124_v34 = vpop.f32.mrf.mxu0 }
 0x158   :  { %v176_v28 = vadd.f32 %v175_v27, %v136_v26 }
 0x159   :  { %v445_v29 = vpop.f32.mrf.mxu1  ;;  %v429_v35 = vpop.f32.mrf.mxu0 }
 0x15a   :  { %v181_v30 = vsel %vm48_vm4, %v176_v28, 0.0 }
 0x15b   :  { %v178_v31 = vpop.f32.mrf.mxu1  ;;  %190 = vrot.lane.b32.xlu0 %v181_v30, %s561_s0  ;;  %192 = vrot.lane.b32.xlu1 %v181_v30, %s559_s25  ;;  %v127_v36 = vpop.f32.mrf.mxu0 }
 0x15d   :  { %v446_v32 = vpop.f32.mrf.mxu1  ;;  %v430_v37 = vpop.f32.mrf.mxu0 }
 0x15f   :  { %182 = vrot.lane.b32.xlu0 %v181_v30, %s565_s29  ;;  %188 = vrot.lane.b32.xlu1 %v181_v30, %s560_s26 }
 0x163   :  { %202 = vperm.xlu0 %488, %v199_v33   ;;  %186 = vrot.lane.b32.xlu1 %v181_v30, %s562_s27 }
 0x167   :  { %184 = vrot.lane.b32.xlu1 %v181_v30, %s564_s28 }
 0x1cd   :  { %v193_v38 = vpop.permute.xlu1 %192  ;;  %v191_v41 = vpop.permute.xlu0 %190 }
 0x1ce   :  { %v197_v39 = vpack.c.bf16 %v193_v38, %v193_v38 }
 0x1d0   :  { %v210_v40 = vsel %vm86_vm2, %v197_v39, 0 }
 0x1d1   :  { %448 = vmatpush3.bf16.msra.mxu0 %v210_v40  ;;  %v189_v42 = vpop.permute.xlu1 %188  ;;  %v183_v46 = vpop.permute.xlu0 %182 }
 0x1d2   :  { %v196_v43 = vpack.c.bf16 %v191_v41, %v189_v42  ;;  %449 = vmatprep.subr.bf16.mxu0 %v556_v1 }
 0x1d5   :  { %450 = vmatpush3.bf16.msra.mxu0 %v196_v43  ;;  %v187_v44 = vpop.permute.xlu1 %186 }
 0x1d6   :  { %v385_v45 = vpack.c.bf16 %v176_v28, %v187_v44  ;;  %451 = vmatprep.subr.bf16.mxu0 %v556_v1 }
 0x1d9   :  { %452 = vmatpush3.bf16.msk.msra.mxu0 %vm384_vm6, %v385_v45  ;;  %v185_v47 = vpop.permute.xlu1 %184 }
 0x1da   :  { %v194_v48 = vpack.c.bf16 %v185_v47, %v183_v46  ;;  %453 = vmatprep.subr.bf16.mxu0 %v556_v1 }
 0x1dd   :  { %454 = vmatpush3.bf16.msra.mxu0 %v194_v48 }
 0x1de   :  { %v203_v50 = vpop.permute.xlu0 %202 }
 0x1e0   :  { %456 = vmatmul.mubr.msk.bf16.vlgmr.msra.gmra.mxu0 %vm205_vm7, %v198_v49 }
 0x2a0   :  { %v246_v51 = vpop.f32.mrf.mxu0 }
 0x2a1   :  { %v247_v52 = vadd.f32 %v246_v51, %v203_v50 }
 0x2a2   :  { %v457_v53 = vpop.f32.mrf.mxu0 }
 0x2a3   :  { %v252_v54 = vsel %vm48_vm4, %v247_v52, 0.0 }
 0x2a4   :  { %257 = vrot.lane.b32.xlu0 %v252_v54, %s560_s26  ;;  %259 = vrot.lane.b32.xlu1 %v252_v54, %s561_s0  ;;  %v249_v55 = vpop.f32.mrf.mxu0  ;;  %s571_s26 = smov [#allocation3]  }
 0x2a5   :  { %s347_s0 = sshll.u32 %s571_s26, 4  ;;  %s348_s0 = int_to_ptr.vmem [resolvable:$true] %s347_s0 }
 0x2a6   :  { %v458_v56 = vpop.f32.mrf.mxu0 }
 0x2a8   :  { %255 = vrot.lane.b32.xlu0 %v252_v54, %s562_s27  ;;  %253 = vrot.lane.b32.xlu1 %v252_v54, %s564_s28  ;;  %s492_s27 = scalar_lea.vmem %s358_s23, 128 }
 0x2a9   :  { %p493_p0 = scmp.ne.s32.totalorder %s358_s23, %s492_s27  ;;  %p498_p2 = scmp.lt.s32.totalorder %s492_s27, %s492_s27 }
 0x2ab   :  { %p499_p3 = por %p498_p2, %p497_p1 }
 0x2ac   :  { %79 = vperm.xlu1 %489, %v76_v57  }
 0x2ad   :  { %p500_p4 = pnand %p499_p3, %p493_p0 }
 0x2b0   :  { %268 = vperm.xlu1 %489, %v265_v58  }
 0x316   :  { %v260_v59 = vpop.permute.xlu1 %259  ;;  %v258_v60 = vpop.permute.xlu0 %257 }
 0x317   :  { %v263_v61 = vpack.c.bf16 %v260_v59, %v260_v59  ;;  %v389_v63 = vpack.c.bf16 %v258_v60, %v247_v52 }
 0x319   :  { %v276_v62 = vsel %vm86_vm2, %v263_v61, 0 }
 0x31a   :  { %460 = vmatpush3.bf16.msra.mxu1 %v276_v62  ;;  %v256_v0 = vpop.permute.xlu0 %255  ;;  %v254_v2 = vpop.permute.xlu1 %253 }
 0x31b   :  { %461 = vmatprep.subr.bf16.mxu1 %v556_v1  ;;  %v261_v3 = vpack.c.bf16 %v256_v0, %v254_v2 }
 0x31e   :  { %462 = vmatpush3.bf16.msk.msra.mxu1 %vm388_vm8, %v389_v63 }
 0x31f   :  { %463 = vmatprep.subr.bf16.mxu1 %v556_v1 }
 0x322   :  { %464 = vmatpush3.bf16.msra.mxu1 %v261_v3 }
 0x325   :  { %466 = vmatmul.mubr.msk.bf16.vlgmr.msra.gmra.mxu1 %vm271_vm9, %v264_v4 }
 0x327   :  { %v80_v5 = vpop.permute.xlu1 %79 }
 0x328   :  { %v125_v6 = vadd.f32 %v124_v34, %v80_v5 }
 0x32a   :  { %v130_v7 = vsel %vm48_vm4, %v125_v6, 0.0 }
 0x32b   :  { %326 = vadd.xlane.f32.xlu0 %v130_v7  ;;  %v320_v14 = vmul.f32 1.442695, %v130_v7  ;;  %v269_v17 = vpop.permute.xlu1 %268 }
 0x32d   :  { %490 = vpow2.f32 %v320_v14 }
 0x33a   :  { %v491_v15 = vpop.eup %490 }
 0x33b   :  { %v323_v21 = vmul.f32 %v491_v15, %v322_v16 }
 0x3b4   :  { %v327_v8 = vpop.xlane.xlu0 %326 }
 0x3b5   :  { %v328_v9 = vrot.slane %v327_v8, 4 }
 0x3b7   :  { %v329_v10 = vadd.f32 %v328_v9, %v327_v8 }
 0x3b9   :  { %v330_v11 = vrot.slane %v329_v10, 2 }
 0x3bb   :  { %v331_v12 = vadd.f32 %v330_v11, %v329_v10 }
 0x3bd   :  { %v332_v1 = vrot.slane %v331_v12, 1 }
 0x3bf   :  { %v333_v13 = vadd.f32 %v332_v1, %v331_v12 }
 0x3c1   :  { %469 = vpush %v333_v13 }
 0x3e5   :  { %v312_v18 = vpop.f32.mrf.mxu1 }
 0x3e6   :  { %v313_v19 = vadd.f32 %v312_v18, %v269_v17 }
 0x3e7   :  { %v467_v20 = vpop.f32.mrf.mxu1 }
 0x3e8   :  { %v318_v22 = vsel %vm48_vm4, %v313_v19, 0.0 }
 0x3e9   :  { %319 = vst [vmem:[#allocation5] sm:$0xff] %v318_v22  ;;  %v315_v23 = vpop.f32.mrf.mxu1  ;;  %v324_v24 = vadd.f32 %v323_v21, %v318_v22 }
 0x3ea   :  { %503 = shalt.err (!%p500_p4)
}
 0x3eb   :  { %360 = dma.vmem_to_hbm [thread:$0]  %s358_s23, 128, %s752_s11, [#allocation6]   ;;  %v468_v26 = vpop.f32.mrf.mxu1  ;;  %325 = vst [vmem:[#allocation3] sm:$0xff] %v324_v24 }
 0x3ec   :  { %s512_s29 = scalar_lea.vmem %s348_s0, 128  ;;  %p517_p6 = scmp.lt.s32.totalorder %s348_s0, %s348_s0 }
 0x3ed   :  { %p513_p5 = scmp.ne.s32.totalorder %s348_s0, %s512_s29  ;;  %p518_p7 = scmp.lt.s32.totalorder %s512_s29, %s512_s29 }
 0x3ef   :  { %p519_p8 = por %p518_p7, %p517_p6 }
 0x3f1   :  { %p520_p9 = pnand %p519_p8, %p513_p5 }
 0x3f3   :  { %523 = shalt.err (!%p520_p9)
}
 0x3f4   :  { %350 = dma.vmem_to_hbm [thread:$0]  %s348_s0, 128, %s751_s10, [#allocation4]   ;;  %vm339_vm10 = vcmask 0  }
 0x3f5   :  { %s572_s14 = smov [#allocation7]   ;;  %s470_s2 = spop %469 }
 0x3f6   :  { %s367_s15 = sshll.u32 %s572_s14, 4  ;;  %s337_s16 = smul.f32 0.0625, %s470_s2  ;;  %s368_s15 = int_to_ptr.vmem [resolvable:$true] %s367_s15 }
 0x3f7   :  { %s532_s11 = scalar_lea.vmem %s368_s15, 16  ;;  %s536_s17 = scalar_lea.vmem %s368_s15, 32 }
 0x3f8   :  { %v338_v25 = vstv %s337_s16  ;;  %p533_p10 = scmp.ne.s32.totalorder %s368_s15, %s532_s11  ;;  %p537_p11 = scmp.lt.s32.totalorder %s368_s15, %s368_s15 }
 0x3f9   :  { %340 = vst.msk [vmem:[#allocation7] sm:$0x1] %vm339_vm10, %v338_v25  ;;  %p538_p12 = scmp.lt.s32.totalorder %s536_s17, %s532_s11 }
 0x3fb   :  { %p539_p13 = por %p538_p12, %p537_p11 }
 0x3fd   :  { %p540_p0 = pnand %p539_p13, %p533_p10 }
 0x3ff   :  { %543 = shalt.err (!%p540_p0)
}
 0x400   :  { %370 = dma.vmem_to_hbm [thread:$0]  %s368_s15, 16, %s753_s12, [#allocation6]  }
 0x401   :  { %552 = dma.done.wait [#allocation4], 128  }
 0x402   :  { %553 = vsyncadd [#allocation4], 4294967168 }
 0x403   :  { %554 = dma.done.wait [#allocation6], 144  }
 0x404   :  { %555 = vsyncadd [#allocation6], 4294967152 }
 0x405   :  { %380 = vsyncpa [#allocation4], 1 }
 0x406   :  { %381 = vsyncpa [#allocation6], 1 }

</bundles_post_ra>
